<compile_context>
chip_gen: v7x
topology: tpu7x:2x2x1
jax: 0.10.0
libtpu: 0.0.40
codegen_flags: <defaults>
</compile_context>

<pallas_src>
import functools

import jax
import jax.numpy as jnp
import numpy as np
from jax.experimental import pallas as pl
from jax.experimental.pallas import tpu as pltpu


# Set to jnp.bfloat16 on v6e/v7x for ~2x MXU throughput (re-validate tolerance:
# the 5 unrolled gated steps compound bf16 rounding).  Kept f32 so the 2e-3
# reference check holds exactly on all generations (incl. v5e).
MXU_DTYPE = jnp.float32


# ----------------------------- Pallas kernels -----------------------------

def conv_encoder_kernel(x_ref, wc_ref, bc_ref, o_ref, *, b, lq, d):
    """One grid step: im2col conv1d(k=3) as ONE matmul -> ReLU -> per-question
    max over the sequence -> lane-dense (1, B*D) store."""
    f32 = jnp.float32
    y = jnp.dot(x_ref[...], wc_ref[...], preferred_element_type=f32) + bc_ref[...]
    y = jnp.maximum(y, 0.0)                                     # [B*Lq, D]
    for i in range(b):                                          # static unroll
        o_ref[:, i * d:(i + 1) * d] = jnp.max(y[i * lq:(i + 1) * lq, :],
                                              axis=0, keepdims=True)


def gnn_kernel(slab_ref, wn_ref, we_ref, woi_ref, wact_ref, wcur_ref,
               whc_ref, ball_ref, o_ref, *,
               steps, gb, rows_per_graph, e_dim, d, mxu_dtype):
    """GNN for a block of GB graphs: node/edge layers + 5 gated propagation
    steps, all expressed as R = GB*Np row matmuls (block-diagonal adjacency)."""
    f32 = jnp.float32
    D, E, GB, Np = d, e_dim, gb, rows_per_graph
    Ne = Np
    R = GB * Np

    def mm(a, b):
        return jnp.dot(a.astype(mxu_dtype), b.astype(mxu_dtype),
                       preferred_element_type=f32)

    # ---- unpack the fused input slab: [GB, Np, 2E+Np+2Ne] -> lane slices ----
    x2 = slab_ref[...].reshape(R, 2 * E + Np + 2 * Ne)
    nodes2 = x2[:, 0:E]                              # [R, E]
    edges2 = x2[:, E:2 * E]                          # [R, E]
    Mn2 = x2[:, 2 * E:2 * E + Np]                    # [R, Np]  node counts
    Meo2 = x2[:, 2 * E + Np:2 * E + Np + Ne]         # [R, Ne]  out-edge counts
    Mei2 = x2[:, 2 * E + Np + Ne:2 * E + Np + 2 * Ne]

    ball = ball_ref[...]                             # [1, 5D] = [bn|be|bz|br|bh]
    bn = ball[:, 0:D]
    be = ball[:, D:2 * D]
    bgate = ball[:, 2 * D:5 * D]                     # [1, 3D]

    # row masks recomputed from adjacency-count row sums (exact replacement of
    # (A.sum(-1) != 0) because adjacency indices are non-negative ints).
    nmask = (jnp.sum(Mn2, axis=-1, keepdims=True) > 0.0).astype(f32)          # [R,1]
    emask = ((jnp.sum(Meo2, axis=-1, keepdims=True)
              + jnp.sum(Mei2, axis=-1, keepdims=True)) > 0.0).astype(f32)     # [R,1]

    # node / edge projection layers (tanh) + masks; super-node rows := 1.0
    cur2 = jnp.tanh(mm(nodes2, wn_ref[...]) + bn) * nmask                     # [R,D]
    rowD = jax.lax.broadcasted_iota(jnp.int32, (R, D), 0)
    cur2 = jnp.where(rowD % Np == 1, 1.0, cur2)

    em2 = jnp.tanh(mm(edges2, we_ref[...]) + be) * emask                      # [R,D]
    out_in = mm(em2, woi_ref[...])                   # [R, 2D] = [out_e | in_e]

    # block-diagonal adjacency matrices: one MXU-sized matmul per use instead
    # of GB per-graph 8x8 micro-matmuls.  tile_T[m, j] = (j % Np == m) spreads
    # the Np count columns across R lanes; the graph-id mask zeroes off-diag
    # blocks (exact: only adds exact zeros to the accumulation).
    mrow = jax.lax.broadcasted_iota(jnp.int32, (Np, R), 0)
    mcol = jax.lax.broadcasted_iota(jnp.int32, (Np, R), 1)
    tile_T = (mcol % Np == mrow).astype(f32)                                  # [Np,R]
    rg = jax.lax.broadcasted_iota(jnp.int32, (R, R), 0) // Np
    cg = jax.lax.broadcasted_iota(jnp.int32, (R, R), 1) // Np
    same_graph = rg == cg

    def blockdiag(counts2):   # [R, Np] -> block-diagonal [R, R]
        tiled = jnp.dot(counts2, tile_T, preferred_element_type=f32)
        return jnp.where(same_graph, tiled, 0.0)

    Mn_bd = blockdiag(Mn2)
    # loop-invariant neighbour-edge aggregation, hoisted out of the 5 steps
    edge_contrib = (mm(blockdiag(Meo2), out_in[:, 0:D])
                    + mm(blockdiag(Mei2), out_in[:, D:2 * D]))                # [R,D]

    # 5 gated propagation steps, statically unrolled.  Keep R in the 128-256
    # range: ga/gc/cur2 are lane-padded to 128, so much larger R would spill
    # the 64-vreg file; gate slices are consumed immediately after compute.
    for _ in range(steps):
        act2 = mm(Mn_bd, cur2) + edge_contrib                                 # [R,D]
        ga = mm(act2, wact_ref[...]) + bgate         # [R,3D] = [z|r|h] act part
        gc = mm(cur2, wcur_ref[...])                 # [R,2D] = [z|r]   cur part
        z = jax.nn.sigmoid(ga[:, 0:D] + gc[:, 0:D])
        r = jax.nn.sigmoid(ga[:, D:2 * D] + gc[:, D:2 * D])
        h = jnp.tanh(ga[:, 2 * D:3 * D] + mm(r * cur2, whc_ref[...]))
        cur2 = (1.0 - z) * cur2 + z * h

    # lane-dense output: super-node (row 1) of every graph packed along lanes
    # of one (1, 1, GB*D) block -> unmasked, dense HBM writeback.
    for g in range(GB):                                                       # static
        o_ref[0, 0:1, g * D:(g + 1) * D] = cur2[g * Np + 1:g * Np + 2, :]


# ----------------------------- wrappers -----------------------------------

def run_conv_encoder(q_emb, Wc0, Wc1, Wc2, bc):
    B, Lq, E = q_emb.shape
    D = Wc0.shape[1]
    qp = jnp.pad(q_emb, ((0, 0), (1, 1), (0, 0)))
    # im2col: three shifted windows concatenated along features -> one matmul
    x3 = jnp.concatenate([qp[:, 0:Lq], qp[:, 1:Lq + 1], qp[:, 2:Lq + 2]], axis=-1)
    x2 = x3.reshape(B * Lq, 3 * E)
    Wc = jnp.concatenate([Wc0, Wc1, Wc2], axis=0)                # [3E, D]
    out = pl.pallas_call(
        functools.partial(conv_encoder_kernel, b=B, lq=Lq, d=D),
        out_shape=jax.ShapeDtypeStruct((1, B * D), jnp.float32),
        grid=(1,),
        in_specs=[
            pl.BlockSpec((B * Lq, 3 * E), lambda i: (0, 0)),
            pl.BlockSpec((3 * E, D), lambda i: (0, 0)),
            pl.BlockSpec((1, D), lambda i: (0, 0)),
        ],
        out_specs=pl.BlockSpec((1, B * D), lambda i: (0, 0)),
    )(x2, Wc, bc)
    return out.reshape(B, D)


def run_gnn(nfeat, efeat, Mn, Me_out, Me_in, p, steps=5, gb=None,
            mxu_dtype=MXU_DTYPE):
    BG, Np, E = nfeat.shape
    Ne = efeat.shape[1]
    D = p["Wn"].shape[1]
    assert Np == Ne, "original code reshapes nodes using edges_per_graph"

    # graphs per block: fill the MXU M-dimension (R = gb*Np ~ 256 rows; 128
    # already saturates v5e's 128-wide MXU).  For tiny BG use ONE block rather
    # than splitting underfilled matmuls across TensorCores; blocks are
    # balanced so padding is minimized.
    if gb is None:
        target_gb = max(1, 256 // Np)
        n_blk = pl.cdiv(BG, min(BG, target_gb))
        gb = pl.cdiv(BG, n_blk)
    n_blk = pl.cdiv(BG, gb)
    BGp = n_blk * gb

    # one fused HBM slab per graph row: [nfeat | efeat | Mn | Meo | Mei]
    slab = jnp.concatenate([nfeat, efeat, Mn, Me_out, Me_in], axis=-1)
    if BGp != BG:
        slab = jnp.pad(slab, ((0, BGp - BG), (0, 0), (0, 0)))
    Wlanes = 2 * E + Np + 2 * Ne

    # fused weight / bias slabs
    W_oi = jnp.concatenate([p["Wout"], p["Win"]], axis=1)                 # [D,2D]
    W_act = jnp.concatenate([p["Wz_a"], p["Wr_a"], p["Wh_a"]], axis=1)    # [D,3D]
    W_cur = jnp.concatenate([p["Wz_c"], p["Wr_c"]], axis=1)               # [D,2D]
    b_all = jnp.concatenate([p["bn"], p["be"], p["bz"], p["br"], p["bh"]],
                            axis=1)                                       # [1,5D]

    kernel = functools.partial(gnn_kernel, steps=steps, gb=gb,
                               rows_per_graph=Np, e_dim=E, d=D,
                               mxu_dtype=mxu_dtype)

    def wspec(shape):
        return pl.BlockSpec(shape, lambda b: (0,) * len(shape))

    out = pl.pallas_call(
        kernel,
        out_shape=jax.ShapeDtypeStruct((n_blk, 1, gb * D), jnp.float32),
        grid=(n_blk,),
        in_specs=[
            pl.BlockSpec((gb, Np, Wlanes), lambda b: (b, 0, 0)),  # fused slab
            wspec((E, D)), wspec((E, D)),                    # node / edge layer
            wspec((D, 2 * D)),                               # [Wout|Win]
            wspec((D, 3 * D)), wspec((D, 2 * D)),            # fused gate slabs
            wspec((D, D)),                                   # Wh_c
            wspec((1, 5 * D)),                               # bias slab
        ],
        out_specs=pl.BlockSpec((1, 1, gb * D), lambda b: (b, 0, 0)),
        compiler_params=pltpu.CompilerParams(
            dimension_semantics=("parallel",),
            vmem_limit_bytes=32 * 1024 * 1024),
    )(slab, p["Wn"], p["We"], W_oi, W_act, W_cur, p["Wh_c"], b_all)
    return out.reshape(BGp, D)[:BG]


# ----------------------------- full forward -------------------------------

def gnn_model_forward(p, questions_m, nodes_m, edges_m, A_nodes, A_edges):
    B, Lq = questions_m.shape
    _, G, Ne, Lw = edges_m.shape
    Np = nodes_m.shape[2]
    assert Np == Ne, "original code reshapes nodes using edges_per_graph"
    E = p["emb"].shape[1]
    D = p["Wn"].shape[1]
    emb = p["emb"]

    # token encoder for the question (single-step fused conv matmul in Pallas)
    q_emb = emb[questions_m]                                             # [B, Lq, E]
    q_enc = run_conv_encoder(q_emb, p["Wc0"], p["Wc1"], p["Wc2"], p["bc"])  # [B, D]

    predictions_mask = (nodes_m.sum(-1).sum(-1) != 0).astype(jnp.float32)   # [B, G]

    # node / edge label embeddings: masked word-sum (plain-JAX gather glue)
    nm_flat = nodes_m.reshape(-1, Lw)
    nfeat = (emb[nm_flat] * (nm_flat != 0).astype(jnp.float32)[..., None]).sum(-2)
    nfeat = nfeat.reshape(-1, Ne, E)
    em_flat = edges_m.reshape(-1, Lw)
    efeat = (emb[em_flat] * (em_flat != 0).astype(jnp.float32)[..., None]).sum(-2)
    efeat = efeat.reshape(-1, Ne, E)

    An = A_nodes.reshape(-1, A_nodes.shape[-2], A_nodes.shape[-1])       # [BG, Np, K]
    Ae = A_edges.reshape(-1, A_edges.shape[-2], A_edges.shape[-1])

    # adjacency lists -> dense count matrices (exact replacement of
    # masked torch.gather(...).sum(2); index 0 == padding)
    Mn = (jax.nn.one_hot(An, Np, dtype=jnp.float32)
          * (An != 0).astype(jnp.float32)[..., None]).sum(axis=2)        # [BG,Np,Np]
    Me = (jax.nn.one_hot(Ae, 2 * Ne, dtype=jnp.float32)
          * (Ae != 0).astype(jnp.float32)[..., None]).sum(axis=2)        # [BG,Np,2Ne]
    Me_out = Me[:, :, :Ne]
    Me_in = Me[:, :, Ne:]

    graph_vecs = run_gnn(nfeat, efeat, Mn, Me_out, Me_in, p)             # [B*G, D]
    graph_vecs = graph_vecs.reshape(B, G, D)

    # predict stage in plain JAX: too small to amortize a pallas_call
    # (Dh=16, G=3 -> pure launch overhead + lane-sparse [G,1] stores).
    qproj = jax.nn.relu(q_enc @ p["Wq"] + p["bq"])                       # [B, Dh]
    gproj = jax.nn.relu(graph_vecs @ p["Wg"] + p["bg"])                  # [B, G, Dh]
    eps = 1e-8
    dots = jnp.sum(gproj * qproj[:, None, :], axis=-1)
    denom = (jnp.maximum(jnp.linalg.norm(gproj, axis=-1), eps)
             * jnp.maximum(jnp.linalg.norm(qproj, axis=-1), eps)[:, None])
    return dots / denom * predictions_mask                               # [B, G]


# --------------------------- pure-JAX reference ----------------------------

def reference_forward(p, questions_m, nodes_m, edges_m, A_nodes, A_edges):
    B, Lq = questions_m.shape
    _, G, Ne, Lw = edges_m.shape
    E = p["emb"].shape[1]
    D = p["Wn"].shape[1]
    emb = p["emb"]

    qe = emb[questions_m]
    qp = jnp.pad(qe, ((0, 0), (1, 1), (0, 0)))
    conv = (qp[:, 0:Lq] @ p["Wc0"] + qp[:, 1:Lq + 1] @ p["Wc1"]
            + qp[:, 2:Lq + 2] @ p["Wc2"] + p["bc"])
    q_enc = jnp.max(jax.nn.relu(conv), axis=1)

    predictions_mask = (nodes_m.sum(-1).sum(-1) != 0).astype(jnp.float32)

    nm_flat = nodes_m.reshape(-1, Lw)
    nfeat = (emb[nm_flat] * (nm_flat != 0).astype(jnp.float32)[..., None]).sum(-2)
    nfeat = nfeat.reshape(-1, Ne, E)
    em_flat = edges_m.reshape(-1, Lw)
    efeat = (emb[em_flat] * (em_flat != 0).astype(jnp.float32)[..., None]).sum(-2)
    efeat = efeat.reshape(-1, Ne, E)

    An = A_nodes.reshape(-1, A_nodes.shape[-2], A_nodes.shape[-1])
    Ae = A_edges.reshape(-1, A_edges.shape[-2], A_edges.shape[-1])

    nodes_mask = (An.sum(-1) != 0).astype(jnp.float32)[..., None]
    edges_mask = (Ae.sum(-1) != 0).astype(jnp.float32)[..., None]
    cur = jnp.tanh(nfeat @ p["Wn"] + p["bn"]) * nodes_mask
    cur = cur.at[:, 1].set(1.0)
    em2 = jnp.tanh(efeat @ p["We"] + p["be"]) * edges_mask
    ecat = jnp.concatenate([em2 @ p["Wout"], em2 @ p["Win"]], axis=1)

    gather = jax.vmap(lambda d, i: d[i])
    for _ in range(5):
        gnod = gather(cur, An)                                 # [BG,Np,K,D]
        gedg = gather(ecat, Ae)
        nmask = (An != 0).astype(jnp.float32)[..., None]
        emask = (Ae != 0).astype(jnp.float32)[..., None]
        act = (gnod * nmask + gedg * emask).sum(2)
        z = jax.nn.sigmoid(act @ p["Wz_a"] + cur @ p["Wz_c"] + p["bz"])
        r = jax.nn.sigmoid(act @ p["Wr_a"] + cur @ p["Wr_c"] + p["br"])
        h = jnp.tanh(act @ p["Wh_a"] + (r * cur) @ p["Wh_c"] + p["bh"])
        cur = (1.0 - z) * cur + z * h

    gvec = cur[:, 1].reshape(B, G, D)

    qproj = jax.nn.relu(q_enc @ p["Wq"] + p["bq"])
    gproj = jax.nn.relu(gvec @ p["Wg"] + p["bg"])
    eps = 1e-8
    dots = jnp.sum(gproj * qproj[:, None, :], axis=-1)
    denom = (jnp.maximum(jnp.linalg.norm(gproj, axis=-1), eps)
             * jnp.maximum(jnp.linalg.norm(qproj, axis=-1), eps)[:, None])
    return dots / denom * predictions_mask


# ------------------------------ params & main ------------------------------

def init_params(key, V, E, D, Dh):
    ks = jax.random.split(key, 24)

    def w(k, shape, fan_in):
        return (jax.random.normal(k, shape, dtype=jnp.float32)
                / np.sqrt(fan_in)).astype(jnp.float32)

    emb = w(ks[0], (V, E), E).at[0].set(0.0)   # padding_idx = 0
    return dict(
        emb=emb,
        Wc0=w(ks[1], (E, D), 3 * E), Wc1=w(ks[2], (E, D), 3 * E),
        Wc2=w(ks[3], (E, D), 3 * E), bc=w(ks[4], (1, D), D),
        Wn=w(ks[5], (E, D), E), bn=w(ks[6], (1, D), D),
        We=w(ks[7], (E, D), E), be=w(ks[8], (1, D), D),
        Wout=w(ks[9], (D, D), D), Win=w(ks[10], (D, D), D),
        Wz_a=w(ks[11], (D, D), 2 * D), Wz_c=w(ks[12], (D, D), 2 * D), bz=w(ks[13], (1, D), D),
        Wr_a=w(ks[14], (D, D), 2 * D), Wr_c=w(ks[15], (D, D), 2 * D), br=w(ks[16], (1, D), D),
        Wh_a=w(ks[17], (D, D), 2 * D), Wh_c=w(ks[18], (D, D), 2 * D), bh=w(ks[19], (1, D), D),
        Wq=w(ks[20], (D, Dh), D), bq=w(ks[21], (1, Dh), Dh),
        Wg=w(ks[22], (D, Dh), D), bg=w(ks[23], (1, Dh), Dh),
    )


if __name__ == "__main__":
    B, G, Np, K, Lw, Lq, V, E, D = 2, 3, 8, 4, 4, 8, 50, 16, 32
    Ne, Dh = Np, D // 2

    key = jax.random.PRNGKey(0)
    kp, kq, kn, ke, kan, kae = jax.random.split(key, 6)
    params = init_params(kp, V, E, D, Dh)

    questions_m = jax.random.randint(kq, (B, Lq), 0, V, dtype=jnp.int32)
    nodes_m = jax.random.randint(kn, (B, G, Np, Lw), 0, V, dtype=jnp.int32)
    edges_m = jax.random.randint(ke, (B, G, Ne, Lw), 0, V, dtype=jnp.int32)
    A_nodes = jax.random.randint(kan, (B, G, Np, K), 0, Np, dtype=jnp.int32)
    A_edges = jax.random.randint(kae, (B, G, Np, K), 0, 2 * Ne, dtype=jnp.int32)

    preds = gnn_model_forward(params, questions_m, nodes_m, edges_m, A_nodes, A_edges)
    preds = jax.block_until_ready(preds)

    ref = jax.block_until_ready(
        reference_forward(params, questions_m, nodes_m, edges_m, A_nodes, A_edges))
    np.testing.assert_allclose(np.asarray(preds), np.asarray(ref),
                               rtol=2e-3, atol=2e-3)
    print("KERNEL_OK")
</pallas_src>

<mosaic_0001>
module attributes {stable_mosaic.version = 11 : i64} {
  func.func @conv_encoder_kernel(%arg0: i32, %arg1: memref<16x48xf32, #tpu.memory_space<vmem>>, %arg2: memref<48x32xf32, #tpu.memory_space<vmem>>, %arg3: memref<1x32xf32, #tpu.memory_space<vmem>>, %arg4: memref<1x64xf32, #tpu.memory_space<vmem>>) attributes {dimension_semantics = [#tpu.dimension_semantics<arbitrary>], iteration_bounds = array<i64: 1>, scalar_prefetch = 0 : i64, scratch_operands = 0 : i64, tpu.core_type = #tpu.core_type<tc>, window_params = [{pipeline_mode = #tpu.pipeline_mode<synchronous>, transform_indices = @transform_0, window_bounds = array<i64: 16, 48>}, {pipeline_mode = #tpu.pipeline_mode<synchronous>, transform_indices = @transform_1, window_bounds = array<i64: 48, 32>}, {pipeline_mode = #tpu.pipeline_mode<synchronous>, transform_indices = @transform_2, window_bounds = array<i64: 1, 32>}, {pipeline_mode = #tpu.pipeline_mode<synchronous>, transform_indices = @transform_3, window_bounds = array<i64: 1, 64>}]} {
    %c0 = arith.constant 0 : index
    %c0_0 = arith.constant 0 : index
    %0 = vector.load %arg1[%c0, %c0_0] : memref<16x48xf32, #tpu.memory_space<vmem>>, vector<16x48xf32>
    %c0_1 = arith.constant 0 : index
    %c0_2 = arith.constant 0 : index
    %1 = vector.load %arg2[%c0_1, %c0_2] : memref<48x32xf32, #tpu.memory_space<vmem>>, vector<48x32xf32>
    %cst = arith.constant dense<0.000000e+00> : vector<16x32xf32>
    %2 = tpu.matmul %0, %1, %cst {dimension_numbers = #tpu.dot_dimension_numbers<[1], [0], [0], [1], [0, 0, 1, 1], [], []>} : vector<16x48xf32>, vector<48x32xf32>, vector<16x32xf32> -> vector<16x32xf32>
    %c0_3 = arith.constant 0 : index
    %c0_4 = arith.constant 0 : index
    %3 = vector.load %arg3[%c0_3, %c0_4] : memref<1x32xf32, #tpu.memory_space<vmem>>, vector<1x32xf32>
    %4 = vector.broadcast %3 : vector<1x32xf32> to vector<16x32xf32>
    %5 = arith.addf %2, %4 : vector<16x32xf32>
    %cst_5 = arith.constant 0.000000e+00 : f32
    %6 = vector.broadcast %cst_5 : f32 to vector<16x32xf32>
    %7 = arith.maximumf %5, %6 : vector<16x32xf32>
    %8 = vector.extract_strided_slice %7 {offsets = [0, 0], sizes = [8, 32], strides = [1, 1]} : vector<16x32xf32> to vector<8x32xf32>
    %cst_6 = arith.constant dense<0xFF800000> : vector<32xf32>
    %9 = vector.multi_reduction <maximumf>, %8, %cst_6 [0] : vector<8x32xf32> to vector<32xf32>
    %10 = vector.shape_cast %9 : vector<32xf32> to vector<1x32xf32>
    %c0_7 = arith.constant 0 : index
    %c0_8 = arith.constant 0 : index
    %11 = vector.load %arg4[%c0_7, %c0_8] : memref<1x64xf32, #tpu.memory_space<vmem>>, vector<1x32xf32>
    tpu.vector_store %arg4[%c0_7, %c0_8], %10 {strides = array<i32>} : memref<1x64xf32, #tpu.memory_space<vmem>>, vector<1x32xf32>,
    %12 = vector.extract_strided_slice %7 {offsets = [8, 0], sizes = [8, 32], strides = [1, 1]} : vector<16x32xf32> to vector<8x32xf32>
    %cst_9 = arith.constant dense<0xFF800000> : vector<32xf32>
    %13 = vector.multi_reduction <maximumf>, %12, %cst_9 [0] : vector<8x32xf32> to vector<32xf32>
    %14 = vector.shape_cast %13 : vector<32xf32> to vector<1x32xf32>
    %c0_10 = arith.constant 0 : index
    %c32 = arith.constant 32 : index
    %15 = vector.load %arg4[%c0_10, %c32] : memref<1x64xf32, #tpu.memory_space<vmem>>, vector<1x32xf32>
    tpu.vector_store %arg4[%c0_10, %c32], %14 {strides = array<i32>} : memref<1x64xf32, #tpu.memory_space<vmem>>, vector<1x32xf32>,
    return
  }
  func.func @transform_0(%arg0: i32) -> (i32, i32) {
    %c0_i32 = arith.constant 0 : i32
    %c0_i32_0 = arith.constant 0 : i32
    %c0_i32_1 = arith.constant 0 : i32
    return %c0_i32, %c0_i32_0 : i32, i32
  }
  func.func @transform_1(%arg0: i32) -> (i32, i32) {
    %c0_i32 = arith.constant 0 : i32
    %c0_i32_0 = arith.constant 0 : i32
    %c0_i32_1 = arith.constant 0 : i32
    return %c0_i32, %c0_i32_0 : i32, i32
  }
  func.func @transform_2(%arg0: i32) -> (i32, i32) {
    %c0_i32 = arith.constant 0 : i32
    %c0_i32_0 = arith.constant 0 : i32
    %c0_i32_1 = arith.constant 0 : i32
    return %c0_i32, %c0_i32_0 : i32, i32
  }
  func.func @transform_3(%arg0: i32) -> (i32, i32) {
    %c0_i32 = arith.constant 0 : i32
    %c0_i32_0 = arith.constant 0 : i32
    %c0_i32_1 = arith.constant 0 : i32
    return %c0_i32, %c0_i32_0 : i32, i32
  }
}

</mosaic_0001>

<bundles_post_ra>
// kernel: tpu_custom_call.1
= control target key start
LH: loop header
LB: loop body
LE: loop exit
PB: predicated region body
PF: predicated region fallthrough
CT: control target
= control target key end

     0   :  { %vm30_vm0 = vcmask 392192   ;;  %s278_s0 = inlined_call_operand.vmem [shape: f32[16,48], index: 0, kind: input, shape index: {}]   ;;  %s279_s1 = inlined_call_operand.vmem [shape: f32[48,32], index: 1, kind: input, shape index: {}]   ;;  %s280_s2 = inlined_call_operand.vmem [shape: f32[1,32], index: 2, kind: input, shape index: {}]   ;;  %s281_s3 = inlined_call_operand.hbm [shape: f32[1,64], index: 3, kind: output, shape index: {}]  }
   0x1   :  { %v17_v0 = vld [vmem:[%s279_s1] sm:$0xff]  ;;  %v18_v1 = vld [vmem:[%s279_s1 + $0x8] sm:$0xff]  ;;  %v19_v2 = vld [vmem:[%s279_s1 + $0x10] sm:$0xff] }
   0x2   :  { %v177_v3 = vpack.c.bf16 %v18_v1, %v17_v0  ;;  %v20_v4 = vld [vmem:[%s279_s1 + $0x18] sm:$0xff]  ;;  %v21_v5 = vld [vmem:[%s279_s1 + $0x20] sm:$0xff]  ;;  %v22_v7 = vld [vmem:[%s279_s1 + $0x28] sm:$0xff] }
   0x3   :  { %v181_v6 = vpack.c.bf16 %v20_v4, %v19_v2  ;;  %v15_v8 = vld [vmem:[%s278_s0] sm:$0xff] }
   0x4   :  { %8 = vsyncpa [#allocation3], 0  ;;  %178 = vmatprep.subr.bf16.mxu0 %v177_v3  ;;  %174 = vmatprep.mubr.msk.f32.mxu0 %vm30_vm0, %v15_v8  ;;  %v185_v9 = vpack.c.bf16 %v22_v7, %v21_v5  ;;  %v16_v10 = vld [vmem:[%s278_s0 + $0x8] sm:$0xff]  ;;  %v151_v11 = vld [vmem:[%s280_s2] ss:$0 sm:$0xff]  ;;  %vm114_vm1 = vcmask 261120  }
   0x5   :  { %180 = vmatpush3.bf16.msra.mxu0 %v177_v3  ;;  %vm122_vm2 = vcmask 253952   ;;  %s215_s0 = smov 32   ;;  %s216_s2 = smov [#allocation2]   ;;  %vm135_vm3 = vcmask 516352  }
   0x6   :  { %182 = vmatprep.subr.bf16.mxu0 %v181_v6  ;;  %s143_s29 = sshll.u32 %s216_s2, 4  ;;  %s144_s29 = int_to_ptr.vmem [resolvable:$true] %s143_s29 }
   0x7   :  { %s191_s30 = scalar_lea.vmem %s144_s29, 16  ;;  %s195_s4 = scalar_lea.vmem %s144_s29, 32 }
   0x8   :  { %p192_p0 = scmp.ne.s32.totalorder %s144_s29, %s191_s30  ;;  %p196_p1 = scmp.lt.s32.totalorder %s144_s29, %s144_s29 }
   0x9   :  { %184 = vmatpush3.bf16.msra.mxu0 %v181_v6  ;;  %p197_p2 = scmp.lt.s32.totalorder %s195_s4, %s191_s30 }
   0xa   :  { %186 = vmatprep.subr.bf16.mxu0 %v185_v9 }
   0xb   :  { %p198_p3 = por %p197_p2, %p196_p1 }
   0xd   :  { %188 = vmatpush3.bf16.msra.mxu0 %v185_v9  ;;  %p199_p4 = pnand %p198_p3, %p192_p0 }
  0x10   :  { %175 = vmatmul.mubr.msk.f32.vlgmr.msra.gmra.mrb[0].mxu0 %vm30_vm0, %v16_v10 }
  0xe3   :  { %v176_v12 = vpop.f32.mrb[0].mxu0 }
  0xe4   :  { %v109_v13 = vadd.f32 %v176_v12, %v151_v11  ;;  %v103_v14 = vpop.f32.mrb[1].mxu0 }
  0xe5   :  { %v104_v15 = vadd.f32 %v151_v11, %v103_v14 }
  0xe6   :  { %v113_v16 = vmax.f32 %v109_v13, 0.0 }
  0xe7   :  { %v112_v17 = vmax.f32 %v104_v15, 0.0 }
  0xe8   :  { %v124_v18 = vsel %vm114_vm1, %v113_v16, -inf }
  0xe9   :  { %v125_v19 = vrot.slane %v124_v18, 4  ;;  %v115_v20 = vsel %vm114_vm1, %v112_v17, -inf }
  0xea   :  { %v116_v21 = vrot.slane %v115_v20, 4 }
  0xeb   :  { %v126_v22 = vmax.f32 %v124_v18, %v125_v19 }
  0xec   :  { %v117_v23 = vmax.f32 %v115_v20, %v116_v21 }
  0xed   :  { %v127_v24 = vrot.slane %v126_v22, 2 }
  0xee   :  { %v118_v25 = vrot.slane %v117_v23, 2 }
  0xef   :  { %v128_v26 = vmax.f32 %v126_v22, %v127_v24 }
  0xf0   :  { %v119_v27 = vmax.f32 %v117_v23, %v118_v25 }
  0xf1   :  { %v129_v28 = vrot.slane %v128_v26, 1 }
  0xf2   :  { %v120_v29 = vrot.slane %v119_v27, 1 }
  0xf3   :  { %v130_v30 = vmax.f32 %v128_v26, %v129_v28 }
  0xf4   :  { %v121_v31 = vmax.f32 %v119_v27, %v120_v29 }
  0xf5   :  { %132 = vrot.lane.b32.xlu0 %v130_v30, %s215_s0 }
  0xf6   :  { %123 = vst.msk [vmem:[#allocation2] sm:$0x1] %vm122_vm2, %v121_v31 }
 0x167   :  { %v133_v32 = vpop.permute.xlu0 %132 }
 0x168   :  { %136 = vst.msk [vmem:[#allocation2] sm:$0x1] %vm135_vm3, %v133_v32 }
 0x169   :  { %202 = shalt.err (!%p199_p4)
}
 0x16a   :  { %s203_s7 = scalar_lea.hbm %s281_s3, 16 }
 0x16b   :  { %p204_p5 = scmp.ne.s32.totalorder %s281_s3, %s203_s7  ;;  %p207_p6 = scmp.lt.u32.totalorder %s203_s7, %s281_s3 }
 0x16d   :  { %p209_p7 = pnand %p207_p6, %p204_p5 }
 0x16f   :  { %212 = shalt.err (!%p209_p7)
}
 0x170   :  { %146 = dma.vmem_to_hbm [thread:$0]  %s144_s29, 16, %s281_s3, [#allocation3]  }
 0x171   :  { %213 = dma.done.wait [#allocation3], 16  }
 0x172   :  { %214 = vsyncadd [#allocation3], 4294967280 }
 0x173   :  { %150 = vsyncpa [#allocation3], 1 }

</bundles_post_ra>
